<compile_context>
chip_gen: v6e
topology: v6e:2x2x1
jax: 0.10.0
libtpu: 0.0.40
codegen_flags: <defaults>
</compile_context>

<pallas_src>
import jax
import jax.numpy as jnp
from jax import lax
from jax.experimental import pallas as pl
from jax.experimental.pallas import tpu as pltpu

LN_EPS = 1e-5          # PyTorch nn.LayerNorm default
_LANES = 128           # TPU vreg lane width


def _round_up(x, m):
    return ((x + m - 1) // m) * m


def _split_bf16(v):
    """Split f32 `v` into (hi, lo): hi exactly bf16-representable, hi + lo == v."""
    hi = v.astype(jnp.bfloat16).astype(jnp.float32)
    return hi, v - hi


def shallow_mlp_kernel(x_ref, w_ref, m_ref, p_ref, o_ref):
    """One row tile of the packed problem.

    x_ref : [TBP, K]  packed activations, K = pack * ob_dim (128 when packed)
    w_ref : [K, N]    block-diagonal weight (pack copies of W^T), N = pack*hidsize
    m_ref : [N, N]    block-diagonal ones/hidsize  (segment-mean broadcast)
    p_ref : [3, N]    bias / ln-gamma / ln-beta, each tiled `pack` times
    o_ref : [TBP, N]  packed outputs (128-lane-dense store)
    """
    x = x_ref[...]
    w = w_ref[...]
    m = m_ref[...]
    b = p_ref[0:1, :]
    gamma = p_ref[1:2, :]
    beta = p_ref[2:3, :]

    # Linear (MXU) + bias; always accumulate in f32.
    y = jnp.dot(x, w, preferred_element_type=jnp.float32) + b

    # LayerNorm over each hidsize-wide lane segment.  Segment mean / mean-square
    # use resident block-diagonal matmuls (MXU has large slack here) so nothing
    # has to cross lanes.  The hi/lo split keeps the statistics ~f32-accurate
    # even if the MXU rounds f32 matmul operands to a single bf16 pass.
    def seg_mean(v):
        hi, lo = _split_bf16(v)
        return (jnp.dot(hi, m, preferred_element_type=jnp.float32)
                + jnp.dot(lo, m, preferred_element_type=jnp.float32))

    mean = seg_mean(y)
    centered = y - mean
    var = seg_mean(centered * centered)
    y_norm = centered * lax.rsqrt(var + LN_EPS)       # rsqrt -> EUP slot

    # Affine + Tanh (EUP; on v6e/v7x check whether the EUP becomes the binding
    # slot once DMA is dense), then a 128-lane-dense store.
    o_ref[...] = jnp.tanh(y_norm * gamma + beta).astype(o_ref.dtype)


def shallow_mlp(x, w_t, b, gamma, beta, *, block_rows=4096, bf16_matmul=False):
    """Forward pass of ShallowMLP: tanh(LayerNorm(x @ W^T + b)).

    x : [B, ob_dim]; w_t : [ob_dim, hidsize] (pre-transposed); b/gamma/beta : [1, hidsize].
    block_rows  : target (un-packed) rows per grid step.
    bf16_matmul : cast x / W to bf16 for the MXU (v6e/v7x); LN / tanh stay f32.
    """
    orig_dtype = x.dtype
    B, ob_dim = x.shape
    hidsize = w_t.shape[1]

    # Row-packing factor: pack `pack` observation rows into one 128-lane row so
    # loads, the matmul and the stores all run lane-dense.  Falls back to
    # pack=1 (still correct, just lane-padded) for awkward dims.
    pack = 1
    if _LANES % ob_dim == 0 and ((_LANES // ob_dim) * hidsize) % _LANES == 0:
        pack = _LANES // ob_dim

    # Pad only to the packing granule (NOT to a multiple of the row tile); the
    # trailing partial grid block is masked by Pallas (LN is row-local, so the
    # garbage rows of a partial block are harmless and never written back).
    B_pad = _round_up(B, pack)
    if B_pad != B:
        x = jnp.concatenate([x, jnp.zeros((B_pad - B, ob_dim), x.dtype)], axis=0)

    K = pack * ob_dim            # packed feature width (128 when packed)
    N = pack * hidsize           # packed output width  (multiple of 128 when packed)
    P = B_pad // pack            # packed row count

    x_packed = x.reshape(P, K)   # free contiguous reshape
    eye = jnp.eye(pack, dtype=jnp.float32)
    w_blk = jnp.kron(eye, w_t.astype(jnp.float32))                       # [K, N]
    seg_m = jnp.kron(eye, jnp.full((hidsize, hidsize), 1.0 / hidsize,
                                   dtype=jnp.float32))                   # [N, N]
    ln_params = jnp.concatenate([jnp.tile(b, (1, pack)),
                                 jnp.tile(gamma, (1, pack)),
                                 jnp.tile(beta, (1, pack))], axis=0)      # [3, N]

    if bf16_matmul:
        # v6e/v7x: bf16-native MXU and half the x HBM traffic.
        x_packed = x_packed.astype(jnp.bfloat16)
        w_blk = w_blk.astype(jnp.bfloat16)

    # Row tile (packed rows): multiple of 8 sublanes, or the full extent.
    default_tbp = max(_round_up(max(block_rows // pack, 1), 8), 8)
    if P > default_tbp:
        tbp = default_tbp
    elif P >= 128:
        tbp = _round_up(pl.cdiv(P, 2), 8)      # >=2 steps: feed both v7x TCs
    else:
        tbp = P                                # tiny batch: one full-extent block
    grid = (pl.cdiv(P, tbp),)

    # VMEM budget from lane-padded tile sizes (+ double buffering + f32 LN
    # temporaries), capped well under v7x's 64 MiB physical VMEM.
    x_bytes = 2 if bf16_matmul else 4
    lane = lambda n: _round_up(n, _LANES)
    sub = lambda n: _round_up(n, 8)
    x_tile = sub(tbp) * lane(K) * x_bytes
    o_tile = sub(tbp) * lane(N) * 4
    resident = (sub(K) * lane(N) * x_bytes      # block-diagonal W
                + sub(N) * lane(N) * 4          # segment-mean matrix
                + sub(3) * lane(N) * 4)         # bias / gamma / beta
    temporaries = 10 * o_tile                   # f32 LN intermediates
    vmem_need = 2 * (x_tile + o_tile) + 2 * resident + temporaries
    vmem_limit = int(min(max(2 * vmem_need, 8 << 20), 40 << 20))

    cost = pl.CostEstimate(
        flops=2 * P * K * N + 8 * P * N * N + 10 * P * N,
        transcendentals=2 * P * N,                              # tanh + rsqrt
        bytes_accessed=(P * K * x_bytes + P * N * 4
                        + K * N * x_bytes + N * N * 4 + 3 * N * 4),
    )

    out_packed = pl.pallas_call(
        shallow_mlp_kernel,
        out_shape=jax.ShapeDtypeStruct((P, N), orig_dtype),
        grid=grid,
        in_specs=[
            pl.BlockSpec((tbp, K), lambda i: (i, 0)),   # streamed activation rows
            pl.BlockSpec((K, N), lambda i: (0, 0)),     # resident block-diag W
            pl.BlockSpec((N, N), lambda i: (0, 0)),     # resident segment-mean
            pl.BlockSpec((3, N), lambda i: (0, 0)),     # resident b / gamma / beta
        ],
        out_specs=pl.BlockSpec((tbp, N), lambda i: (i, 0)),
        compiler_params=pltpu.CompilerParams(
            dimension_semantics=("parallel",),          # batch tiles over TCs
            vmem_limit_bytes=vmem_limit,
        ),
        cost_estimate=cost,
    )(x_packed, w_blk, seg_m, ln_params)

    # Undo the packing (free contiguous reshape) and drop padding rows.
    return out_packed.reshape(B_pad, hidsize)[:B]


def orthogonal_init(key, out_dim, in_dim, gain):
    """Deterministic orthogonal init (mimics torch.nn.init.orthogonal_)."""
    a = jax.random.normal(key, (out_dim, in_dim), dtype=jnp.float32)
    transpose = out_dim < in_dim
    if transpose:
        a = a.T
    q, r = jnp.linalg.qr(a)
    q = q * jnp.sign(jnp.diagonal(r))[None, :]   # sign fix for uniqueness
    if transpose:
        q = q.T
    return gain * q  # [out_dim, in_dim]


def _reference(x, w_t, b, gamma, beta):
    """Pure-JAX reference: tanh(LayerNorm(x @ W^T + b))."""
    y = x @ w_t + b
    mu = y.mean(-1, keepdims=True)
    var = ((y - mu) ** 2).mean(-1, keepdims=True)
    return jnp.tanh((y - mu) / jnp.sqrt(var + LN_EPS) * gamma + beta)


if __name__ == "__main__":
    # Shapes consistent with the module: obs dim 16, hidsize 32, small batch 8.
    batch, ob_dim, hidsize = 8, 16, 32

    key = jax.random.PRNGKey(0)
    k_x, k_w = jax.random.split(key)

    # Parameters per init(weight_scale=5/3): orthogonal W, bias 0, LN w=1/b=0.
    w = orthogonal_init(k_w, hidsize, ob_dim, gain=5.0 / 3.0)   # [hidsize, ob_dim]
    w_t = w.T                                                   # [ob_dim, hidsize]
    b = jnp.zeros((1, hidsize), dtype=jnp.float32)
    gamma = jnp.ones((1, hidsize), dtype=jnp.float32)
    beta = jnp.zeros((1, hidsize), dtype=jnp.float32)

    x = jax.random.normal(k_x, (batch, ob_dim), dtype=jnp.float32)
    ref = _reference(x, w_t, b, gamma, beta)

    # Tolerance note: MXU f32 contract precision is implementation-defined; the
    # compensated segment-mean matmuls keep the true error ~1e-4, so 1e-3 is a
    # safe but still meaningful bound (naive bf16 stats would exceed it).
    out = jax.block_until_ready(shallow_mlp(x, w_t, b, gamma, beta))
    assert out.shape == (batch, hidsize)
    assert jnp.allclose(out, ref, atol=1e-3), "mismatch vs reference"

    # Ragged batch: exercises the packing-granule pad path.
    out_r = jax.block_until_ready(shallow_mlp(x[:5], w_t, b, gamma, beta))
    assert out_r.shape == (5, hidsize)
    assert jnp.allclose(out_r, ref[:5], atol=1e-3), "ragged mismatch"

    # Larger batch: multi-step grid with a masked trailing partial block.
    x_big = jax.random.normal(jax.random.PRNGKey(1), (5000, ob_dim), jnp.float32)
    ref_big = _reference(x_big, w_t, b, gamma, beta)
    out_big = jax.block_until_ready(
        shallow_mlp(x_big, w_t, b, gamma, beta, block_rows=2048))
    assert out_big.shape == (5000, hidsize)
    assert jnp.allclose(out_big, ref_big, atol=1e-3), "large-batch mismatch"

    # bf16 MXU path (v6e/v7x bandwidth optimization); looser tolerance by design.
    out_bf16 = jax.block_until_ready(
        shallow_mlp(x_big, w_t, b, gamma, beta, block_rows=2048, bf16_matmul=True))
    assert out_bf16.shape == (5000, hidsize)
    assert jnp.allclose(out_bf16, ref_big, atol=1e-1), "bf16 path mismatch"

    print("KERNEL_OK")
</pallas_src>

<mosaic_0001>
module attributes {stable_mosaic.version = 11 : i64} {
  func.func @shallow_mlp_kernel(%arg0: i32, %arg1: memref<1x128xf32, #tpu.memory_space<vmem>>, %arg2: memref<128x256xf32, #tpu.memory_space<vmem>>, %arg3: memref<256x256xf32, #tpu.memory_space<vmem>>, %arg4: memref<3x256xf32, #tpu.memory_space<vmem>>, %arg5: memref<1x256xf32, #tpu.memory_space<vmem>>) attributes {dimension_semantics = [#tpu.dimension_semantics<parallel>], iteration_bounds = array<i64: 1>, scalar_prefetch = 0 : i64, scratch_operands = 0 : i64, tpu.core_type = #tpu.core_type<tc>, window_params = [{transform_indices = @transform_0, window_bounds = array<i64: 1, 128>}, {pipeline_mode = #tpu.pipeline_mode<synchronous>, transform_indices = @transform_1, window_bounds = array<i64: 128, 256>}, {pipeline_mode = #tpu.pipeline_mode<synchronous>, transform_indices = @transform_2, window_bounds = array<i64: 256, 256>}, {pipeline_mode = #tpu.pipeline_mode<synchronous>, transform_indices = @transform_3, window_bounds = array<i64: 3, 256>}, {transform_indices = @transform_4, window_bounds = array<i64: 1, 256>}]} {
    %c0 = arith.constant 0 : index
    %c0_0 = arith.constant 0 : index
    %0 = vector.load %arg1[%c0, %c0_0] : memref<1x128xf32, #tpu.memory_space<vmem>>, vector<1x128xf32>
    %c0_1 = arith.constant 0 : index
    %c0_2 = arith.constant 0 : index
    %1 = vector.load %arg2[%c0_1, %c0_2] : memref<128x256xf32, #tpu.memory_space<vmem>>, vector<128x256xf32>
    %c0_3 = arith.constant 0 : index
    %c0_4 = arith.constant 0 : index
    %2 = vector.load %arg3[%c0_3, %c0_4] : memref<256x256xf32, #tpu.memory_space<vmem>>, vector<256x256xf32>
    %c0_5 = arith.constant 0 : index
    %c0_6 = arith.constant 0 : index
    %3 = vector.load %arg4[%c0_5, %c0_6] : memref<3x256xf32, #tpu.memory_space<vmem>>, vector<1x256xf32>
    %c1 = arith.constant 1 : index
    %c0_7 = arith.constant 0 : index
    %4 = vector.load %arg4[%c1, %c0_7] : memref<3x256xf32, #tpu.memory_space<vmem>>, vector<1x256xf32>
    %c2 = arith.constant 2 : index
    %c0_8 = arith.constant 0 : index
    %5 = vector.load %arg4[%c2, %c0_8] : memref<3x256xf32, #tpu.memory_space<vmem>>, vector<1x256xf32>
    %cst = arith.constant dense<0.000000e+00> : vector<1x256xf32>
    %6 = tpu.matmul %0, %1, %cst {dimension_numbers = #tpu.dot_dimension_numbers<[1], [0], [0], [1], [0, 0, 1, 1], [], []>} : vector<1x128xf32>, vector<128x256xf32>, vector<1x256xf32> -> vector<1x256xf32>
    %7 = arith.addf %6, %3 : vector<1x256xf32>
    %8 = arith.truncf %7 : vector<1x256xf32> to vector<1x256xbf16>
    %9 = arith.extf %8 : vector<1x256xbf16> to vector<1x256xf32>
    %10 = arith.subf %7, %9 : vector<1x256xf32>
    %cst_9 = arith.constant dense<0.000000e+00> : vector<1x256xf32>
    %11 = tpu.matmul %9, %2, %cst_9 {dimension_numbers = #tpu.dot_dimension_numbers<[1], [0], [0], [1], [0, 0, 1, 1], [], []>} : vector<1x256xf32>, vector<256x256xf32>, vector<1x256xf32> -> vector<1x256xf32>
    %cst_10 = arith.constant dense<0.000000e+00> : vector<1x256xf32>
    %12 = tpu.matmul %10, %2, %cst_10 {dimension_numbers = #tpu.dot_dimension_numbers<[1], [0], [0], [1], [0, 0, 1, 1], [], []>} : vector<1x256xf32>, vector<256x256xf32>, vector<1x256xf32> -> vector<1x256xf32>
    %13 = arith.addf %11, %12 : vector<1x256xf32>
    %14 = arith.subf %7, %13 : vector<1x256xf32>
    %15 = arith.mulf %14, %14 : vector<1x256xf32>
    %16 = arith.truncf %15 : vector<1x256xf32> to vector<1x256xbf16>
    %17 = arith.extf %16 : vector<1x256xbf16> to vector<1x256xf32>
    %18 = arith.subf %15, %17 : vector<1x256xf32>
    %cst_11 = arith.constant dense<0.000000e+00> : vector<1x256xf32>
    %19 = tpu.matmul %17, %2, %cst_11 {dimension_numbers = #tpu.dot_dimension_numbers<[1], [0], [0], [1], [0, 0, 1, 1], [], []>} : vector<1x256xf32>, vector<256x256xf32>, vector<1x256xf32> -> vector<1x256xf32>
    %cst_12 = arith.constant dense<0.000000e+00> : vector<1x256xf32>
    %20 = tpu.matmul %18, %2, %cst_12 {dimension_numbers = #tpu.dot_dimension_numbers<[1], [0], [0], [1], [0, 0, 1, 1], [], []>} : vector<1x256xf32>, vector<256x256xf32>, vector<1x256xf32> -> vector<1x256xf32>
    %21 = arith.addf %19, %20 : vector<1x256xf32>
    %cst_13 = arith.constant 9.99999974E-6 : f32
    %22 = vector.broadcast %cst_13 : f32 to vector<1x256xf32>
    %23 = arith.addf %21, %22 : vector<1x256xf32>
    %24 = math.rsqrt %23 : vector<1x256xf32>
    %25 = arith.mulf %14, %24 : vector<1x256xf32>
    %26 = arith.mulf %25, %4 : vector<1x256xf32>
    %27 = arith.addf %26, %5 : vector<1x256xf32>
    %28 = math.tanh %27 : vector<1x256xf32>
    %c0_14 = arith.constant 0 : index
    %c0_15 = arith.constant 0 : index
    %29 = vector.load %arg5[%c0_14, %c0_15] : memref<1x256xf32, #tpu.memory_space<vmem>>, vector<1x256xf32>
    tpu.vector_store %arg5[%c0_14, %c0_15], %28 {strides = array<i32>} : memref<1x256xf32, #tpu.memory_space<vmem>>, vector<1x256xf32>,
    return
  }
  func.func @transform_0(%arg0: i32) -> (i32, i32) {
    %c0_i32 = arith.constant 0 : i32
    %c0_i32_0 = arith.constant 0 : i32
    return %arg0, %c0_i32 : i32, i32
  }
  func.func @transform_1(%arg0: i32) -> (i32, i32) {
    %c0_i32 = arith.constant 0 : i32
    %c0_i32_0 = arith.constant 0 : i32
    %c0_i32_1 = arith.constant 0 : i32
    return %c0_i32, %c0_i32_0 : i32, i32
  }
  func.func @transform_2(%arg0: i32) -> (i32, i32) {
    %c0_i32 = arith.constant 0 : i32
    %c0_i32_0 = arith.constant 0 : i32
    %c0_i32_1 = arith.constant 0 : i32
    return %c0_i32, %c0_i32_0 : i32, i32
  }
  func.func @transform_3(%arg0: i32) -> (i32, i32) {
    %c0_i32 = arith.constant 0 : i32
    %c0_i32_0 = arith.constant 0 : i32
    %c0_i32_1 = arith.constant 0 : i32
    return %c0_i32, %c0_i32_0 : i32, i32
  }
  func.func @transform_4(%arg0: i32) -> (i32, i32) {
    %c0_i32 = arith.constant 0 : i32
    %c0_i32_0 = arith.constant 0 : i32
    return %arg0, %c0_i32 : i32, i32
  }
}

</mosaic_0001>

<bundles_post_ra>
// kernel: tpu_custom_call.1
= control target key start
LH: loop header
LB: loop body
LE: loop exit
PB: predicated region body
PF: predicated region fallthrough
CT: control target
= control target key end

     0   :  { %9 = vsyncpa [#allocation3], 0  ;;  %s1214_s0 = inlined_call_operand.hbm [shape: f32[1,128], index: 0, kind: input, shape index: {}]   ;;  %s1215_s1 = inlined_call_operand.hbm [shape: f32[128,256], index: 1, kind: input, shape index: {}]   ;;  %s1216_s2 = inlined_call_operand.hbm [shape: f32[256,256], index: 2, kind: input, shape index: {}]   ;;  %s1217_s3 = inlined_call_operand.hbm [shape: f32[3,256], index: 3, kind: input, shape index: {}]   ;;  %s1218_s4 = inlined_call_operand.hbm [shape: f32[1,256], index: 4, kind: output, shape index: {}]  }
   0x1   :  { %10 = vsyncpa [#allocation6], 0 }
   0x2   :  { %11 = vsyncpa [#allocation9], 0 }
   0x3   :  { %12 = vsyncpa [#allocation4], 0  ;;  %s752_s15 = smov [#allocation5]  }
   0x4   :  { %s28_s16 = sshll.u32 %s752_s15, 4  ;;  %s29_s16 = int_to_ptr.vmem [resolvable:$true] %s28_s16 }
   0x5   :  { %s652_s17 = scalar_lea.vmem %s29_s16, 4096  ;;  %p657_p1 = scmp.lt.s32.totalorder %s29_s16, %s29_s16 }
   0x6   :  { %p653_p0 = scmp.ne.s32.totalorder %s29_s16, %s652_s17  ;;  %p658_p2 = scmp.lt.s32.totalorder %s652_s17, %s652_s17 }
   0x8   :  { %p659_p3 = por %p658_p2, %p657_p1 }
   0xa   :  { %p660_p4 = pnand %p659_p3, %p653_p0 }
   0xc   :  { %663 = shalt.err (!%p660_p4)
}
   0xd   :  { %s753_s18 = smov 256   ;;  %s754_s19 = smov 16  }
   0xe   :  { %34 = dma.hbm_to_vmem [thread:$0]  %s1215_s1, 4096, %s29_s16, [#allocation6], %s753_s18, %s753_s18, %s754_s19  }
   0xf   :  { %s755_s22 = smov [#allocation2]   ;;  %s756_s24 = smov [#allocation7]  }
  0x10   :  { %s19_s23 = sshll.u32 %s755_s22, 4  ;;  %s40_s25 = sshll.u32 %s756_s24, 4  ;;  %s20_s23 = int_to_ptr.vmem [resolvable:$true] %s19_s23  ;;  %s41_s25 = int_to_ptr.vmem [resolvable:$true] %s40_s25 }
  0x11   :  { %s672_s26 = scalar_lea.vmem %s20_s23, 16  ;;  %s676_s27 = scalar_lea.vmem %s20_s23, 32 }
  0x12   :  { %p673_p5 = scmp.ne.s32.totalorder %s20_s23, %s672_s26  ;;  %p677_p6 = scmp.lt.s32.totalorder %s20_s23, %s20_s23 }
  0x13   :  { %p678_p7 = scmp.lt.s32.totalorder %s676_s27, %s672_s26 }
  0x15   :  { %p679_p8 = por %p678_p7, %p677_p6 }
  0x17   :  { %p680_p9 = pnand %p679_p8, %p673_p5 }
  0x19   :  { %683 = shalt.err (!%p680_p9)
}
  0x1a   :  { %22 = dma.hbm_to_vmem [thread:$0]  %s1214_s0, 16, %s20_s23, [#allocation3]  }
  0x1b   :  { %s692_s30 = scalar_lea.vmem %s41_s25, 8192  ;;  %p697_p11 = scmp.lt.s32.totalorder %s41_s25, %s41_s25 }
  0x1c   :  { %p693_p10 = scmp.ne.s32.totalorder %s41_s25, %s692_s30  ;;  %p698_p12 = scmp.lt.s32.totalorder %s692_s30, %s692_s30 }
  0x1e   :  { %p699_p13 = por %p698_p12, %p697_p11 }
  0x20   :  { %p700_p0 = pnand %p699_p13, %p693_p10 }
  0x22   :  { %703 = shalt.err (!%p700_p0)
}
  0x23   :  { %46 = dma.hbm_to_vmem [thread:$0]  %s1216_s2, 8192, %s41_s25, [#allocation6], %s753_s18, %s753_s18, %s754_s19  }
  0x24   :  { %s757_s6 = smov [#allocation8]  }
  0x25   :  { %s53_s7 = sshll.u32 %s757_s6, 4  ;;  %s54_s7 = int_to_ptr.vmem [resolvable:$true] %s53_s7 }
  0x26   :  { %s712_s8 = scalar_lea.vmem %s54_s7, 128  ;;  %p717_p2 = scmp.lt.s32.totalorder %s54_s7, %s54_s7 }
  0x27   :  { %p713_p1 = scmp.ne.s32.totalorder %s54_s7, %s712_s8  ;;  %p718_p3 = scmp.lt.s32.totalorder %s712_s8, %s712_s8 }
  0x29   :  { %p719_p4 = por %p718_p3, %p717_p2 }
  0x2b   :  { %p720_p5 = pnand %p719_p4, %p713_p1 }
  0x2d   :  { %723 = shalt.err (!%p720_p5)
}
  0x2e   :  { %56 = dma.hbm_to_vmem [thread:$0]  %s1217_s3, 128, %s54_s7, [#allocation9]  }
  0x2f   :  { %744 = dma.done.wait [#allocation3], 16  }
  0x30   :  { %745 = vsyncadd [#allocation3], 4294967280 }
  0x31   :  { %746 = dma.done.wait [#allocation6], 12288  }
  0x32   :  { %747 = vsyncadd [#allocation6], 4294955008 }
  0x33   :  { %748 = dma.done.wait [#allocation9], 128  }
  0x34   :  { %749 = vsyncadd [#allocation9], 4294967168  ;;  %v758_v0 = vmov 0.0   ;;  %v101_v1 = vld [vmem:[#allocation5 + $0xf8] sm:$0xff]  ;;  %v100_v2 = vld [vmem:[#allocation5 + $0xf0] sm:$0xff]  ;;  %s760_s2 = smov [#allocation10]  }
  0x35   :  { %246 = vmatprep.mubr.f32.mxu0 %v758_v0  ;;  %v99_v3 = vld [vmem:[#allocation5 + $0xe8] sm:$0xff]  ;;  %182 = vmatprep.subr.mxu0 %v101_v1  ;;  %v98_v4 = vld [vmem:[#allocation5 + $0xe0] sm:$0xff]  ;;  %v97_v5 = vld [vmem:[#allocation5 + $0xd8] sm:$0xff]  ;;  %s616_s3 = sshll.u32 %s760_s2, 4  ;;  %s617_s3 = int_to_ptr.vmem [resolvable:$true] %s616_s3 }
  0x36   :  { %183 = vmatpush1.msra.mxu0 %v100_v2  ;;  %v96_v6 = vld [vmem:[#allocation5 + $0xd0] sm:$0xff]  ;;  %v95_v7 = vld [vmem:[#allocation5 + $0xc8] sm:$0xff]  ;;  %v94_v8 = vld [vmem:[#allocation5 + $0xc0] sm:$0xff]  ;;  %s724_s10 = scalar_lea.vmem %s617_s3, 32  ;;  %p729_p7 = scmp.lt.s32.totalorder %s617_s3, %s617_s3 }
  0x37   :  { %184 = vmatprep.subr.mxu0 %v99_v3  ;;  %v93_v9 = vld [vmem:[#allocation5 + $0xb8] sm:$0xff]  ;;  %v92_v10 = vld [vmem:[#allocation5 + $0xb0] sm:$0xff]  ;;  %v91_v11 = vld [vmem:[#allocation5 + $0xa8] sm:$0xff]  ;;  %p725_p6 = scmp.ne.s32.totalorder %s617_s3, %s724_s10  ;;  %p730_p8 = scmp.lt.s32.totalorder %s724_s10, %s724_s10 }
  0x38   :  { %185 = vmatpush1.msra.mxu0 %v98_v4  ;;  %v90_v12 = vld [vmem:[#allocation5 + $0xa0] sm:$0xff]  ;;  %v89_v13 = vld [vmem:[#allocation5 + $0x98] sm:$0xff]  ;;  %v88_v14 = vld [vmem:[#allocation5 + $0x90] sm:$0xff] }
  0x39   :  { %186 = vmatprep.subr.mxu0 %v97_v5  ;;  %v798_v15 = vld [vmem:[#allocation7 + $0xf8] sm:$0xff]  ;;  %v87_v16 = vld [vmem:[#allocation5 + $0x88] sm:$0xff]  ;;  %v800_v17 = vld [vmem:[#allocation7 + $0xf0] sm:$0xff]  ;;  %p731_p9 = por %p730_p8, %p729_p7 }
  0x3a   :  { %187 = vmatpush1.msra.mxu0 %v96_v6  ;;  %259 = vmatprep.subr.mxu1 %v798_v15  ;;  %v86_v18 = vld [vmem:[#allocation5 + $0x80] sm:$0xff]  ;;  %v803_v19 = vld [vmem:[#allocation7 + $0xe8] sm:$0xff]  ;;  %v85_v20 = vld [vmem:[#allocation5 + $0x78] sm:$0xff] }
  0x3b   :  { %188 = vmatprep.subr.mxu0 %v95_v7  ;;  %260 = vmatpush1.msra.mxu1 %v800_v17  ;;  %v806_v21 = vld [vmem:[#allocation7 + $0xe0] sm:$0xff]  ;;  %v84_v22 = vld [vmem:[#allocation5 + $0x70] sm:$0xff]  ;;  %v809_v23 = vld [vmem:[#allocation7 + $0xd8] sm:$0xff]  ;;  %p732_p10 = pnand %p731_p9, %p725_p6 }
  0x3c   :  { %189 = vmatpush1.msra.mxu0 %v94_v8  ;;  %261 = vmatprep.subr.mxu1 %v803_v19  ;;  %v83_v24 = vld [vmem:[#allocation5 + $0x68] sm:$0xff]  ;;  %v812_v25 = vld [vmem:[#allocation7 + $0xd0] sm:$0xff]  ;;  %v82_v26 = vld [vmem:[#allocation5 + $0x60] sm:$0xff] }
  0x3d   :  { %190 = vmatprep.subr.mxu0 %v93_v9  ;;  %262 = vmatpush1.msra.mxu1 %v806_v21  ;;  %v815_v27 = vld [vmem:[#allocation7 + $0xc8] sm:$0xff]  ;;  %v81_v28 = vld [vmem:[#allocation5 + $0x58] sm:$0xff]  ;;  %v818_v29 = vld [vmem:[#allocation7 + $0xc0] sm:$0xff] }
  0x3e   :  { %191 = vmatpush1.msra.mxu0 %v92_v10  ;;  %263 = vmatprep.subr.mxu1 %v809_v23  ;;  %v80_v30 = vld [vmem:[#allocation5 + $0x50] sm:$0xff]  ;;  %v821_v31 = vld [vmem:[#allocation7 + $0xb8] sm:$0xff]  ;;  %v79_v32 = vld [vmem:[#allocation5 + $0x48] sm:$0xff] }
  0x3f   :  { %192 = vmatprep.subr.mxu0 %v91_v11  ;;  %264 = vmatpush1.msra.mxu1 %v812_v25  ;;  %v824_v33 = vld [vmem:[#allocation7 + $0xb0] sm:$0xff]  ;;  %v78_v34 = vld [vmem:[#allocation5 + $0x40] sm:$0xff]  ;;  %v827_v35 = vld [vmem:[#allocation7 + $0xa8] sm:$0xff] }
  0x40   :  { %193 = vmatpush1.msra.mxu0 %v90_v12  ;;  %265 = vmatprep.subr.mxu1 %v815_v27  ;;  %v77_v36 = vld [vmem:[#allocation5 + $0x38] sm:$0xff]  ;;  %v830_v37 = vld [vmem:[#allocation7 + $0xa0] sm:$0xff]  ;;  %v76_v38 = vld [vmem:[#allocation5 + $0x30] sm:$0xff] }
  0x41   :  { %194 = vmatprep.subr.mxu0 %v89_v13  ;;  %266 = vmatpush1.msra.mxu1 %v818_v29  ;;  %v833_v39 = vld [vmem:[#allocation7 + $0x98] sm:$0xff]  ;;  %v75_v40 = vld [vmem:[#allocation5 + $0x28] sm:$0xff]  ;;  %v836_v41 = vld [vmem:[#allocation7 + $0x90] sm:$0xff] }
  0x42   :  { %195 = vmatpush1.msra.mxu0 %v88_v14  ;;  %267 = vmatprep.subr.mxu1 %v821_v31  ;;  %v74_v42 = vld [vmem:[#allocation5 + $0x20] sm:$0xff]  ;;  %v839_v43 = vld [vmem:[#allocation7 + $0x88] sm:$0xff]  ;;  %v73_v44 = vld [vmem:[#allocation5 + $0x18] sm:$0xff] }
  0x43   :  { %196 = vmatprep.subr.mxu0 %v87_v16  ;;  %268 = vmatpush1.msra.mxu1 %v824_v33  ;;  %v842_v45 = vld [vmem:[#allocation7 + $0x80] sm:$0xff]  ;;  %v72_v46 = vld [vmem:[#allocation5 + $0x10] sm:$0xff]  ;;  %v845_v47 = vld [vmem:[#allocation7 + $0x78] sm:$0xff] }
  0x44   :  { %197 = vmatpush1.msra.mxu0 %v86_v18  ;;  %269 = vmatprep.subr.mxu1 %v827_v35  ;;  %v71_v48 = vld [vmem:[#allocation5 + $0x8] sm:$0xff]  ;;  %v848_v49 = vld [vmem:[#allocation7 + $0x70] sm:$0xff]  ;;  %v70_v50 = vld [vmem:[#allocation5] sm:$0xff] }
  0x45   :  { %198 = vmatprep.subr.mxu0 %v85_v20  ;;  %270 = vmatpush1.msra.mxu1 %v830_v37  ;;  %v851_v51 = vld [vmem:[#allocation7 + $0x68] sm:$0xff]  ;;  %v69_v52 = vld [vmem:[#allocation2] sm:$0x1]  ;;  %v854_v53 = vld [vmem:[#allocation7 + $0x60] sm:$0xff] }
  0x46   :  { %199 = vmatpush1.msra.mxu0 %v84_v22  ;;  %271 = vmatprep.subr.mxu1 %v833_v39  ;;  %v857_v54 = vld [vmem:[#allocation7 + $0x58] sm:$0xff]  ;;  %v862_v55 = vld [vmem:[#allocation7 + $0x50] sm:$0xff]  ;;  %v865_v56 = vld [vmem:[#allocation7 + $0x48] sm:$0xff] }
  0x47   :  { %200 = vmatprep.subr.mxu0 %v83_v24  ;;  %272 = vmatpush1.msra.mxu1 %v836_v41  ;;  %v869_v57 = vld [vmem:[#allocation7 + $0x40] sm:$0xff]  ;;  %v873_v58 = vld [vmem:[#allocation7 + $0x38] sm:$0xff]  ;;  %v877_v59 = vld [vmem:[#allocation7 + $0x30] sm:$0xff] }
  0x48   :  { %201 = vmatpush1.msra.mxu0 %v82_v26  ;;  %273 = vmatprep.subr.mxu1 %v839_v43  ;;  %v881_v60 = vld [vmem:[#allocation7 + $0x28] sm:$0xff]  ;;  %v885_v61 = vld [vmem:[#allocation7 + $0x20] sm:$0xff]  ;;  %v889_v62 = vld [vmem:[#allocation7 + $0x18] sm:$0xff] }
  0x49   :  { %202 = vmatprep.subr.mxu0 %v81_v28  ;;  %274 = vmatpush1.msra.mxu1 %v842_v45  ;;  %v893_v63 = vld [vmem:[#allocation7 + $0x10] sm:$0xff]  ;;  %v897_v0 = vld [vmem:[#allocation7 + $0x8] sm:$0xff]  ;;  %v901_v1 = vld [vmem:[#allocation7] sm:$0xff] }
  0x4a   :  { %203 = vmatpush1.msra.mxu0 %v80_v30  ;;  %275 = vmatprep.subr.mxu1 %v845_v47  ;;  %v905_v2 = vld [vmem:[#allocation7 + $0x1f8] sm:$0xff]  ;;  %v909_v3 = vld [vmem:[#allocation7 + $0x1f0] sm:$0xff]  ;;  %v913_v4 = vld [vmem:[#allocation7 + $0x1e8] sm:$0xff] }
  0x4b   :  { %204 = vmatprep.subr.mxu0 %v79_v32  ;;  %276 = vmatpush1.msra.mxu1 %v848_v49  ;;  %v917_v5 = vld [vmem:[#allocation7 + $0x1e0] sm:$0xff]  ;;  %v921_v6 = vld [vmem:[#allocation7 + $0x1d8] sm:$0xff]  ;;  %v925_v7 = vld [vmem:[#allocation7 + $0x1d0] sm:$0xff] }
  0x4c   :  { %205 = vmatpush1.msra.mxu0 %v78_v34  ;;  %277 = vmatprep.subr.mxu1 %v851_v51  ;;  %v929_v8 = vld [vmem:[#allocation7 + $0x1c8] sm:$0xff]  ;;  %v933_v9 = vld [vmem:[#allocation7 + $0x1c0] sm:$0xff]  ;;  %v937_v10 = vld [vmem:[#allocation7 + $0x1b8] sm:$0xff] }
  0x4d   :  { %206 = vmatprep.subr.mxu0 %v77_v36  ;;  %278 = vmatpush1.msra.mxu1 %v854_v53  ;;  %v941_v11 = vld [vmem:[#allocation7 + $0x1b0] sm:$0xff]  ;;  %v945_v12 = vld [vmem:[#allocation7 + $0x1a8] sm:$0xff]  ;;  %v949_v13 = vld [vmem:[#allocation7 + $0x1a0] sm:$0xff] }
  0x4e   :  { %207 = vmatpush1.msra.mxu0 %v76_v38  ;;  %279 = vmatprep.subr.mxu1 %v857_v54  ;;  %v953_v14 = vld [vmem:[#allocation7 + $0x198] sm:$0xff]  ;;  %v957_v16 = vld [vmem:[#allocation7 + $0x190] sm:$0xff]  ;;  %v961_v18 = vld [vmem:[#allocation7 + $0x188] sm:$0xff] }
  0x4f   :  { %208 = vmatprep.subr.mxu0 %v75_v40  ;;  %280 = vmatpush1.msra.mxu1 %v862_v55  ;;  %v965_v20 = vld [vmem:[#allocation7 + $0x180] sm:$0xff]  ;;  %v969_v22 = vld [vmem:[#allocation7 + $0x178] sm:$0xff]  ;;  %v973_v24 = vld [vmem:[#allocation7 + $0x170] sm:$0xff] }
  0x50   :  { %209 = vmatpush1.msra.mxu0 %v74_v42  ;;  %281 = vmatprep.subr.mxu1 %v865_v56  ;;  %v977_v26 = vld [vmem:[#allocation7 + $0x168] sm:$0xff]  ;;  %v981_v28 = vld [vmem:[#allocation7 + $0x160] sm:$0xff]  ;;  %v985_v30 = vld [vmem:[#allocation7 + $0x158] sm:$0xff] }
  0x51   :  { %210 = vmatprep.subr.mxu0 %v73_v44  ;;  %282 = vmatpush1.msra.mxu1 %v869_v57  ;;  %1247 = vst [vmem:[#allocation15_spill] sm:$0xff] %v981_v28  ;;  %1248 = vst [vmem:[#allocation16_spill] sm:$0xff] %v985_v30  ;;  %v989_v32 = vld [vmem:[#allocation7 + $0x150] sm:$0xff]  ;;  %v1014_v34 = vld [vmem:[#allocation7 + $0x148] sm:$0xff] }
  0x52   :  { %211 = vmatpush1.msra.mxu0 %v72_v46  ;;  %283 = vmatprep.subr.mxu1 %v873_v58  ;;  %1249 = vst [vmem:[#allocation17_spill] sm:$0xff] %v989_v32  ;;  %1250 = vst [vmem:[#allocation18_spill] sm:$0xff] %v1014_v34  ;;  %v1017_v36 = vld [vmem:[#allocation7 + $0x140] sm:$0xff]  ;;  %v1021_v38 = vld [vmem:[#allocation7 + $0x138] sm:$0xff] }
  0x53   :  { %212 = vmatprep.subr.mxu0 %v71_v48  ;;  %284 = vmatpush1.msra.mxu1 %v877_v59  ;;  %1251 = vst [vmem:[#allocation19_spill] sm:$0xff] %v1017_v36  ;;  %1252 = vst [vmem:[#allocation20_spill] sm:$0xff] %v1021_v38  ;;  %v1025_v40 = vld [vmem:[#allocation7 + $0x130] sm:$0xff]  ;;  %v1029_v42 = vld [vmem:[#allocation7 + $0x128] sm:$0xff] }
  0x54   :  { %213 = vmatpush1.msra.mxu0 %v70_v50  ;;  %285 = vmatprep.subr.mxu1 %v881_v60  ;;  %1253 = vst [vmem:[#allocation21_spill] sm:$0xff] %v1025_v40  ;;  %1254 = vst [vmem:[#allocation22_spill] sm:$0xff] %v1029_v42  ;;  %v1033_v44 = vld [vmem:[#allocation7 + $0x120] sm:$0xff]  ;;  %v1037_v46 = vld [vmem:[#allocation7 + $0x118] sm:$0xff] }
  0x55   :  { %247 = vmatmul.mubr.f32.vlgmr.msra.gmra.mxu0 %v69_v52  ;;  %330 = vmatprep.subr.mxu0 %v798_v15  ;;  %1255 = vst [vmem:[#allocation23_spill] sm:$0xff] %v1033_v44  ;;  %1256 = vst [vmem:[#allocation24_spill] sm:$0xff] %v1037_v46  ;;  %v1039_v48 = vld [vmem:[#allocation7 + $0x110] sm:$0xff]  ;;  %v1041_v50 = vld [vmem:[#allocation7 + $0x108] sm:$0xff] }
  0x56   :  { %331 = vmatpush1.msra.mxu0 %v800_v17  ;;  %286 = vmatpush1.msra.mxu1 %v885_v61  ;;  %1257 = vst [vmem:[#allocation25_spill] sm:$0xff] %v1039_v48  ;;  %1258 = vst [vmem:[#allocation26_spill] sm:$0xff] %v1041_v50  ;;  %v1045_v52 = vld [vmem:[#allocation7 + $0x100] sm:$0xff] }
  0x57   :  { %332 = vmatprep.subr.mxu0 %v803_v19  ;;  %287 = vmatprep.subr.mxu1 %v889_v62  ;;  %1259 = vst [vmem:[#allocation27_spill] sm:$0xff] %v1045_v52 }
  0x58   :  { %333 = vmatpush1.msra.mxu0 %v806_v21  ;;  %288 = vmatpush1.msra.mxu1 %v893_v63 }
  0x59   :  { %334 = vmatprep.subr.mxu0 %v809_v23  ;;  %289 = vmatprep.subr.mxu1 %v897_v0 }
  0x5a   :  { %335 = vmatpush1.msra.mxu0 %v812_v25  ;;  %290 = vmatpush1.msra.mxu1 %v901_v1 }
  0x5b   :  { %336 = vmatprep.subr.mxu0 %v815_v27  ;;  %291 = vmatprep.subr.mxu1 %v905_v2 }
  0x5c   :  { %337 = vmatpush1.msra.mxu0 %v818_v29  ;;  %292 = vmatpush2.msra.mxu1 %v909_v3 }
  0x5d   :  { %338 = vmatprep.subr.mxu0 %v821_v31  ;;  %293 = vmatprep.subr.mxu1 %v913_v4 }
  0x5e   :  { %339 = vmatpush1.msra.mxu0 %v824_v33  ;;  %294 = vmatpush2.msra.mxu1 %v917_v5 }
  0x5f   :  { %340 = vmatprep.subr.mxu0 %v827_v35  ;;  %295 = vmatprep.subr.mxu1 %v921_v6 }
  0x60   :  { %341 = vmatpush1.msra.mxu0 %v830_v37  ;;  %296 = vmatpush2.msra.mxu1 %v925_v7 }
  0x61   :  { %342 = vmatprep.subr.mxu0 %v833_v39  ;;  %297 = vmatprep.subr.mxu1 %v929_v8 }
  0x62   :  { %343 = vmatpush1.msra.mxu0 %v836_v41  ;;  %298 = vmatpush2.msra.mxu1 %v933_v9 }
  0x63   :  { %344 = vmatprep.subr.mxu0 %v839_v43  ;;  %299 = vmatprep.subr.mxu1 %v937_v10 }
  0x64   :  { %345 = vmatpush1.msra.mxu0 %v842_v45  ;;  %300 = vmatpush2.msra.mxu1 %v941_v11 }
  0x65   :  { %346 = vmatprep.subr.mxu0 %v845_v47  ;;  %301 = vmatprep.subr.mxu1 %v945_v12 }
  0x66   :  { %347 = vmatpush1.msra.mxu0 %v848_v49  ;;  %302 = vmatpush2.msra.mxu1 %v949_v13 }
  0x67   :  { %348 = vmatprep.subr.mxu0 %v851_v51  ;;  %303 = vmatprep.subr.mxu1 %v953_v14 }
  0x68   :  { %349 = vmatpush1.msra.mxu0 %v854_v53  ;;  %304 = vmatpush2.msra.mxu1 %v957_v16 }
  0x69   :  { %350 = vmatprep.subr.mxu0 %v857_v54  ;;  %305 = vmatprep.subr.mxu1 %v961_v18 }
  0x6a   :  { %351 = vmatpush1.msra.mxu0 %v862_v55  ;;  %306 = vmatpush2.msra.mxu1 %v965_v20 }
  0x6b   :  { %352 = vmatprep.subr.mxu0 %v865_v56  ;;  %307 = vmatprep.subr.mxu1 %v969_v22 }
  0x6c   :  { %353 = vmatpush1.msra.mxu0 %v869_v57  ;;  %308 = vmatpush2.msra.mxu1 %v973_v24 }
  0x6d   :  { %354 = vmatprep.subr.mxu0 %v873_v58  ;;  %309 = vmatprep.subr.mxu1 %v977_v26 }
  0x6e   :  { %355 = vmatpush1.msra.mxu0 %v877_v59  ;;  %310 = vmatpush2.msra.mxu1 %v981_v28 }
  0x6f   :  { %356 = vmatprep.subr.mxu0 %v881_v60  ;;  %311 = vmatprep.subr.mxu1 %v985_v30 }
  0x70   :  { %357 = vmatpush1.msra.mxu0 %v885_v61  ;;  %312 = vmatpush2.msra.mxu1 %v989_v32 }
  0x71   :  { %358 = vmatprep.subr.mxu0 %v889_v62  ;;  %313 = vmatprep.subr.mxu1 %v1014_v34 }
  0x72   :  { %359 = vmatpush1.msra.mxu0 %v893_v63  ;;  %314 = vmatpush2.msra.mxu1 %v1017_v36 }
  0x73   :  { %360 = vmatprep.subr.mxu0 %v897_v0  ;;  %315 = vmatprep.subr.mxu1 %v1021_v38 }
  0x74   :  { %361 = vmatpush1.msra.mxu0 %v901_v1  ;;  %316 = vmatpush2.msra.mxu1 %v1025_v40 }
  0x75   :  { %362 = vmatprep.subr.mxu0 %v905_v2  ;;  %317 = vmatprep.subr.mxu1 %v1029_v42 }
  0x76   :  { %363 = vmatpush2.msra.mxu0 %v909_v3  ;;  %318 = vmatpush2.msra.mxu1 %v1033_v44 }
  0x77   :  { %364 = vmatprep.subr.mxu0 %v913_v4  ;;  %319 = vmatprep.subr.mxu1 %v1037_v46 }
  0x78   :  { %365 = vmatpush2.msra.mxu0 %v917_v5  ;;  %320 = vmatpush2.msra.mxu1 %v1039_v48 }
  0x79   :  { %366 = vmatprep.subr.mxu0 %v921_v6  ;;  %321 = vmatprep.subr.mxu1 %v1041_v50 }
  0x7a   :  { %367 = vmatpush2.msra.mxu0 %v925_v7  ;;  %322 = vmatpush2.msra.mxu1 %v1045_v52 }
  0x7b   :  { %368 = vmatprep.subr.mxu0 %v929_v8  ;;  %411 = vmatprep.subr.mxu1 %v798_v15 }
  0x7c   :  { %369 = vmatpush2.msra.mxu0 %v933_v9 }
  0x7d   :  { %370 = vmatprep.subr.mxu0 %v937_v10 }
  0x7e   :  { %371 = vmatpush2.msra.mxu0 %v941_v11 }
  0x7f   :  { %372 = vmatprep.subr.mxu0 %v945_v12 }
  0x80   :  { %373 = vmatpush2.msra.mxu0 %v949_v13 }
  0x81   :  { %374 = vmatprep.subr.mxu0 %v953_v14 }
  0x82   :  { %375 = vmatpush2.msra.mxu0 %v957_v16 }
  0x83   :  { %376 = vmatprep.subr.mxu0 %v961_v18 }
  0x84   :  { %377 = vmatpush2.msra.mxu0 %v965_v20 }
  0x85   :  { %378 = vmatprep.subr.mxu0 %v969_v22 }
  0x86   :  { %379 = vmatpush2.msra.mxu0 %v973_v24 }
  0x87   :  { %380 = vmatprep.subr.mxu0 %v977_v26 }
  0x88   :  { %381 = vmatpush2.msra.mxu0 %v981_v28 }
  0x89   :  { %382 = vmatprep.subr.mxu0 %v985_v30 }
  0x8a   :  { %383 = vmatpush2.msra.mxu0 %v989_v32 }
  0x8b   :  { %384 = vmatprep.subr.mxu0 %v1014_v34 }
  0x8c   :  { %385 = vmatpush2.msra.mxu0 %v1017_v36 }
  0x8d   :  { %386 = vmatprep.subr.mxu0 %v1021_v38 }
  0x8e   :  { %387 = vmatpush2.msra.mxu0 %v1025_v40  ;;  %v166_v40 = vld [vmem:[#allocation8] ss:$4 sm:$0x3] }
  0x8f   :  { %388 = vmatprep.subr.mxu0 %v1029_v42 }
  0x90   :  { %389 = vmatpush2.msra.mxu0 %v1033_v44  ;;  %v1239_v44 = vlaneseq }
  0x91   :  { %390 = vmatprep.subr.mxu0 %v1037_v46 }
  0x92   :  { %391 = vmatpush2.msra.mxu0 %v1039_v48  ;;  %v1057_v42 = vshrl.u32 %v1239_v44, 7 }
  0x93   :  { %392 = vmatprep.subr.mxu0 %v1041_v50 }
  0x94   :  { %393 = vmatpush2.msra.mxu0 %v1045_v52  ;;  %1260 = vst [vmem:[#allocation28_spill] sm:$0xff] %v1057_v42  ;;  %v1060_v46 = vsub.s32 0, %v1057_v42  ;;  %v1063_v48 = vsub.s32 1, %v1057_v42 }
  0x95   :  { %482 = vmatprep.subr.mxu0 %v798_v15 }
  0x96   :  { %v175_v38 = vrot.slane %v166_v40, %v1060_v46  ;;  %v179_v50 = vrot.slane %v166_v40, %v1063_v48 }
 0x115   :  { %v248_v52 = vpop.f32.mrf.mxu0 }
 0x116   :  { %v1067_v36 = vadd.f32 %v248_v52, %v175_v38  ;;  %v1274_v38 = vld [vmem:[#allocation28_spill] sm:$0xff]  ;;  %v1275_v52 = vlaneseq }
 0x117   :  { %v250_v34 = vpop.f32.mrf.mxu0 }
 0x118   :  { %v253_v15 = vpack.c.bf16 %v1067_v36, %v1067_v36  ;;  %v1071_v44 = vadd.f32 %v250_v34, %v179_v50  ;;  %vm607_vm0 = vcmp.lt.s32.totalorder %v1275_v52, 256 }
 0x11a   :  { %v254_v32 = vpack.c.bf16 %v1071_v44, %v1071_v44  ;;  %v255_v30 = vunpack.c.l.bf16 %v253_v15 }
 0x11c   :  { %v256_v28 = vunpack.c.l.bf16 %v254_v32  ;;  %v257_v40 = vsub.f32 %v1067_v36, %v255_v30 }
 0x11e   :  { %394 = vmatprep.mubr.f32.mxu0 %v256_v28  ;;  %v258_v42 = vsub.f32 %v1071_v44, %v256_v28 }
 0x11f   :  { %395 = vmatmul.mubr.f32.vlgmr.msra.gmra.mxu0 %v255_v30  ;;  %v759_v30 = vmov 1966171168  }
 0x120   :  { %323 = vmatprep.mubr.f32.mxu1 %v258_v42  ;;  %483 = vmatpush1.msra.mxu0 %v800_v17  ;;  %v591_v32 = vunpack.c.l.s4 %v759_v30 }
 0x121   :  { %324 = vmatmul.mubr.f32.vlgmr.msra.gmra.mxu1 %v257_v40  ;;  %484 = vmatprep.subr.mxu0 %v803_v19 }
 0x122   :  { %412 = vmatpush1.msra.mxu1 %v800_v17  ;;  %485 = vmatpush1.msra.mxu0 %v806_v21  ;;  %v1261_v17 = vld [vmem:[#allocation15_spill] sm:$0xff]  ;;  %v592_v34 = vunpack.c.0.s8 %v591_v32 }
 0x123   :  { %413 = vmatprep.subr.mxu1 %v803_v19  ;;  %486 = vmatprep.subr.mxu0 %v809_v23  ;;  %v1262_v19 = vld [vmem:[#allocation16_spill] sm:$0xff] }
 0x124   :  { %414 = vmatpush1.msra.mxu1 %v806_v21  ;;  %487 = vmatpush1.msra.mxu0 %v812_v25  ;;  %v1263_v21 = vld [vmem:[#allocation17_spill] sm:$0xff]  ;;  %v595_v42 = vsub.s32 %v592_v34, %v1274_v38 }
 0x125   :  { %415 = vmatprep.subr.mxu1 %v809_v23  ;;  %488 = vmatprep.subr.mxu0 %v815_v27  ;;  %v1264_v23 = vld [vmem:[#allocation18_spill] sm:$0xff] }
 0x126   :  { %416 = vmatpush1.msra.mxu1 %v812_v25  ;;  %489 = vmatpush1.msra.mxu0 %v818_v29  ;;  %v1265_v25 = vld [vmem:[#allocation19_spill] sm:$0xff] }
 0x127   :  { %417 = vmatprep.subr.mxu1 %v815_v27  ;;  %490 = vmatprep.subr.mxu0 %v821_v31  ;;  %v1266_v27 = vld [vmem:[#allocation20_spill] sm:$0xff] }
 0x128   :  { %418 = vmatpush1.msra.mxu1 %v818_v29  ;;  %491 = vmatpush1.msra.mxu0 %v824_v33  ;;  %v1267_v29 = vld [vmem:[#allocation21_spill] sm:$0xff] }
 0x129   :  { %419 = vmatprep.subr.mxu1 %v821_v31  ;;  %492 = vmatprep.subr.mxu0 %v827_v35  ;;  %v1268_v31 = vld [vmem:[#allocation22_spill] sm:$0xff] }
 0x12a   :  { %420 = vmatpush1.msra.mxu1 %v824_v33  ;;  %493 = vmatpush1.msra.mxu0 %v830_v37  ;;  %v1269_v33 = vld [vmem:[#allocation23_spill] sm:$0xff] }
 0x12b   :  { %421 = vmatprep.subr.mxu1 %v827_v35  ;;  %494 = vmatprep.subr.mxu0 %v833_v39  ;;  %v1270_v35 = vld [vmem:[#allocation24_spill] sm:$0xff] }
 0x12c   :  { %422 = vmatpush1.msra.mxu1 %v830_v37  ;;  %495 = vmatpush1.msra.mxu0 %v836_v41  ;;  %v1271_v37 = vld [vmem:[#allocation25_spill] sm:$0xff] }
 0x12d   :  { %423 = vmatprep.subr.mxu1 %v833_v39  ;;  %496 = vmatprep.subr.mxu0 %v839_v43  ;;  %v1272_v39 = vld [vmem:[#allocation26_spill] sm:$0xff] }
 0x12e   :  { %424 = vmatpush1.msra.mxu1 %v836_v41  ;;  %497 = vmatpush1.msra.mxu0 %v842_v45  ;;  %v1273_v41 = vld [vmem:[#allocation27_spill] sm:$0xff] }
 0x12f   :  { %425 = vmatprep.subr.mxu1 %v839_v43  ;;  %498 = vmatprep.subr.mxu0 %v845_v47 }
 0x130   :  { %426 = vmatpush1.msra.mxu1 %v842_v45  ;;  %499 = vmatpush1.msra.mxu0 %v848_v49 }
 0x131   :  { %427 = vmatprep.subr.mxu1 %v845_v47  ;;  %500 = vmatprep.subr.mxu0 %v851_v51 }
 0x132   :  { %428 = vmatpush1.msra.mxu1 %v848_v49  ;;  %501 = vmatpush1.msra.mxu0 %v854_v53 }
 0x133   :  { %429 = vmatprep.subr.mxu1 %v851_v51  ;;  %502 = vmatprep.subr.mxu0 %v857_v54 }
 0x134   :  { %430 = vmatpush1.msra.mxu1 %v854_v53  ;;  %503 = vmatpush1.msra.mxu0 %v862_v55 }
 0x135   :  { %431 = vmatprep.subr.mxu1 %v857_v54  ;;  %504 = vmatprep.subr.mxu0 %v865_v56 }
 0x136   :  { %432 = vmatpush1.msra.mxu1 %v862_v55  ;;  %505 = vmatpush1.msra.mxu0 %v869_v57 }
 0x137   :  { %433 = vmatprep.subr.mxu1 %v865_v56  ;;  %506 = vmatprep.subr.mxu0 %v873_v58 }
 0x138   :  { %434 = vmatpush1.msra.mxu1 %v869_v57  ;;  %507 = vmatpush1.msra.mxu0 %v877_v59 }
 0x139   :  { %435 = vmatprep.subr.mxu1 %v873_v58  ;;  %508 = vmatprep.subr.mxu0 %v881_v60 }
 0x13a   :  { %436 = vmatpush1.msra.mxu1 %v877_v59  ;;  %509 = vmatpush1.msra.mxu0 %v885_v61 }
 0x13b   :  { %437 = vmatprep.subr.mxu1 %v881_v60  ;;  %510 = vmatprep.subr.mxu0 %v889_v62 }
 0x13c   :  { %438 = vmatpush1.msra.mxu1 %v885_v61  ;;  %511 = vmatpush1.msra.mxu0 %v893_v63 }
 0x13d   :  { %439 = vmatprep.subr.mxu1 %v889_v62  ;;  %512 = vmatprep.subr.mxu0 %v897_v0 }
 0x13e   :  { %440 = vmatpush1.msra.mxu1 %v893_v63  ;;  %513 = vmatpush1.msra.mxu0 %v901_v1 }
 0x13f   :  { %441 = vmatprep.subr.mxu1 %v897_v0  ;;  %514 = vmatprep.subr.mxu0 %v905_v2 }
 0x140   :  { %442 = vmatpush1.msra.mxu1 %v901_v1  ;;  %515 = vmatpush2.msra.mxu0 %v909_v3 }
 0x141   :  { %443 = vmatprep.subr.mxu1 %v905_v2  ;;  %516 = vmatprep.subr.mxu0 %v913_v4 }
 0x142   :  { %444 = vmatpush2.msra.mxu1 %v909_v3  ;;  %517 = vmatpush2.msra.mxu0 %v917_v5 }
 0x143   :  { %445 = vmatprep.subr.mxu1 %v913_v4  ;;  %518 = vmatprep.subr.mxu0 %v921_v6 }
 0x144   :  { %446 = vmatpush2.msra.mxu1 %v917_v5  ;;  %519 = vmatpush2.msra.mxu0 %v925_v7 }
 0x145   :  { %447 = vmatprep.subr.mxu1 %v921_v6  ;;  %520 = vmatprep.subr.mxu0 %v929_v8 }
 0x146   :  { %448 = vmatpush2.msra.mxu1 %v925_v7  ;;  %521 = vmatpush2.msra.mxu0 %v933_v9 }
 0x147   :  { %449 = vmatprep.subr.mxu1 %v929_v8  ;;  %522 = vmatprep.subr.mxu0 %v937_v10  ;;  %v168_v8 = vld [vmem:[#allocation8 + $0x1] ss:$4 sm:$0x3] }
 0x148   :  { %450 = vmatpush2.msra.mxu1 %v933_v9  ;;  %523 = vmatpush2.msra.mxu0 %v941_v11  ;;  %v170_v9 = vld [vmem:[#allocation8 + $0x2] ss:$4 sm:$0x3] }
 0x149   :  { %451 = vmatprep.subr.mxu1 %v937_v10  ;;  %524 = vmatprep.subr.mxu0 %v945_v12  ;;  %v563_v10 = vrot.slane %v168_v8, %v1060_v46 }
 0x14a   :  { %452 = vmatpush2.msra.mxu1 %v941_v11  ;;  %525 = vmatpush2.msra.mxu0 %v949_v13 }
 0x14b   :  { %453 = vmatprep.subr.mxu1 %v945_v12  ;;  %526 = vmatprep.subr.mxu0 %v953_v14  ;;  %v576_v12 = vrot.slane %v170_v9, %v1060_v46 }
 0x14c   :  { %454 = vmatpush2.msra.mxu1 %v949_v13  ;;  %527 = vmatpush2.msra.mxu0 %v957_v16  ;;  %v567_v13 = vrot.slane %v168_v8, %v1063_v48 }
 0x14d   :  { %455 = vmatprep.subr.mxu1 %v953_v14  ;;  %528 = vmatprep.subr.mxu0 %v961_v18 }
 0x14e   :  { %456 = vmatpush2.msra.mxu1 %v957_v16  ;;  %529 = vmatpush2.msra.mxu0 %v965_v20 }
 0x14f   :  { %457 = vmatprep.subr.mxu1 %v961_v18  ;;  %530 = vmatprep.subr.mxu0 %v969_v22  ;;  %v580_v18 = vrot.slane %v170_v9, %v1063_v48 }
 0x150   :  { %458 = vmatpush2.msra.mxu1 %v965_v20  ;;  %531 = vmatpush2.msra.mxu0 %v973_v24 }
 0x151   :  { %459 = vmatprep.subr.mxu1 %v969_v22  ;;  %532 = vmatprep.subr.mxu0 %v977_v26 }
 0x152   :  { %460 = vmatpush2.msra.mxu1 %v973_v24  ;;  %533 = vmatpush2.msra.mxu0 %v1261_v17 }
 0x153   :  { %461 = vmatprep.subr.mxu1 %v977_v26  ;;  %534 = vmatprep.subr.mxu0 %v1262_v19 }
 0x154   :  { %462 = vmatpush2.msra.mxu1 %v1261_v17  ;;  %535 = vmatpush2.msra.mxu0 %v1263_v21 }
 0x155   :  { %463 = vmatprep.subr.mxu1 %v1262_v19  ;;  %536 = vmatprep.subr.mxu0 %v1264_v23 }
 0x156   :  { %464 = vmatpush2.msra.mxu1 %v1263_v21  ;;  %537 = vmatpush2.msra.mxu0 %v1265_v25 }
 0x157   :  { %465 = vmatprep.subr.mxu1 %v1264_v23  ;;  %538 = vmatprep.subr.mxu0 %v1266_v27 }
 0x158   :  { %466 = vmatpush2.msra.mxu1 %v1265_v25  ;;  %539 = vmatpush2.msra.mxu0 %v1267_v29 }
 0x159   :  { %467 = vmatprep.subr.mxu1 %v1266_v27  ;;  %540 = vmatprep.subr.mxu0 %v1268_v31 }
 0x15a   :  { %468 = vmatpush2.msra.mxu1 %v1267_v29  ;;  %541 = vmatpush2.msra.mxu0 %v1269_v33 }
 0x15b   :  { %469 = vmatprep.subr.mxu1 %v1268_v31  ;;  %542 = vmatprep.subr.mxu0 %v1270_v35 }
 0x15c   :  { %470 = vmatpush2.msra.mxu1 %v1269_v33  ;;  %543 = vmatpush2.msra.mxu0 %v1271_v37 }
 0x15d   :  { %471 = vmatprep.subr.mxu1 %v1270_v35  ;;  %544 = vmatprep.subr.mxu0 %v1272_v39 }
 0x15e   :  { %472 = vmatpush2.msra.mxu1 %v1271_v37  ;;  %545 = vmatpush2.msra.mxu0 %v1273_v41 }
 0x15f   :  { %473 = vmatprep.subr.mxu1 %v1272_v39 }
 0x160   :  { %474 = vmatpush2.msra.mxu1 %v1273_v41 }
 0x1df   :  { %v396_v43 = vpop.f32.mrf.mxu0 }
 0x1e1   :  { %v325_v45 = vpop.f32.mrf.mxu1  ;;  %v398_v49 = vpop.f32.mrf.mxu0 }
 0x1e2   :  { %v397_v47 = vadd.f32 %v396_v43, %v325_v45 }
 0x1e3   :  { %v327_v51 = vpop.f32.mrf.mxu1 }
 0x1e4   :  { %v401_v53 = vsub.f32 %v1067_v36, %v397_v47  ;;  %v399_v54 = vadd.f32 %v398_v49, %v327_v51 }
 0x1e6   :  { %v403_v55 = vmul.f32 %v401_v53, %v401_v53  ;;  %v402_v56 = vsub.f32 %v1071_v44, %v399_v54 }
 0x1e8   :  { %v405_v57 = vpack.c.bf16 %v403_v55, %v403_v55  ;;  %v404_v58 = vmul.f32 %v402_v56, %v402_v56 }
 0x1ea   :  { %v406_v59 = vpack.c.bf16 %v404_v58, %v404_v58  ;;  %v407_v60 = vunpack.c.l.bf16 %v405_v57 }
 0x1ec   :  { %v408_v61 = vunpack.c.l.bf16 %v406_v59  ;;  %v409_v63 = vsub.f32 %v403_v55, %v407_v60 }
 0x1ee   :  { %546 = vmatprep.mubr.f32.mxu0 %v408_v61  ;;  %v410_v62 = vsub.f32 %v404_v58, %v408_v61 }
 0x1ef   :  { %547 = vmatmul.mubr.f32.vlgmr.msra.gmra.mxu0 %v407_v60 }
 0x1f0   :  { %475 = vmatprep.mubr.f32.mxu1 %v410_v62 }
 0x1f1   :  { %476 = vmatmul.mubr.f32.vlgmr.msra.gmra.mxu1 %v409_v63 }
 0x2af   :  { %v548_v0 = vpop.f32.mrf.mxu0 }
 0x2b1   :  { %v477_v1 = vpop.f32.mrf.mxu1  ;;  %v550_v3 = vpop.f32.mrf.mxu0 }
 0x2b2   :  { %v549_v2 = vadd.f32 %v548_v0, %v477_v1 }
 0x2b3   :  { %v479_v4 = vpop.f32.mrf.mxu1 }
 0x2b4   :  { %v553_v5 = vadd.f32 1e-05, %v549_v2  ;;  %v551_v6 = vadd.f32 %v550_v3, %v479_v4 }
 0x2b6   :  { %636 = vrsqrt.f32 %v553_v5  ;;  %v554_v7 = vadd.f32 1e-05, %v551_v6 }
 0x2b8   :  { %638 = vrsqrt.f32 %v554_v7 }
 0x2c3   :  { %v637_v11 = vpop.eup %636 }
 0x2c4   :  { %v557_v14 = vmul.f32 %v637_v11, %v401_v53 }
 0x2c5   :  { %v639_v16 = vpop.eup %638 }
 0x2c6   :  { %v570_v20 = vmul.f32 %v563_v10, %v557_v14  ;;  %v558_v22 = vmul.f32 %v639_v16, %v402_v56 }
 0x2c8   :  { %v583_v24 = vadd.f32 %v576_v12, %v570_v20  ;;  %v571_v26 = vmul.f32 %v567_v13, %v558_v22 }
 0x2ca   :  { %v584_v28 = vadd.f32 %v580_v18, %v571_v26  ;;  %640 = vtanh.f32 %v583_v24 }
 0x2cc   :  { %642 = vtanh.f32 %v584_v28 }
 0x2d7   :  { %v641_v36 = vpop.eup %640 }
 0x2d9   :  { %v643_v44 = vpop.eup %642 }
 0x2da   :  { %v589_v46 = vcombine.low %v641_v36, %v643_v44 }
 0x2dc   :  { %v596_v50 = vrot.slane %v589_v46, %v595_v42 }
 0x2de   :  { %v603_v48 = vrot.slane %v596_v50, %v595_v42 }
 0x2e0   :  { %609 = vst.msk [vmem:[#allocation10] sm:$0x3] %vm607_vm0, %v603_v48 }
 0x2e1   :  { %735 = shalt.err (!%p732_p10)
}
 0x2e2   :  { %619 = dma.vmem_to_hbm [thread:$0]  %s617_s3, 32, %s1218_s4, [#allocation4]  }
 0x2e3   :  { %750 = dma.done.wait [#allocation4], 32  }
 0x2e4   :  { %751 = vsyncadd [#allocation4], 4294967264 }
 0x2e5   :  { %623 = vsyncpa [#allocation3], 1 }
 0x2e6   :  { %624 = vsyncpa [#allocation6], 1 }
 0x2e7   :  { %625 = vsyncpa [#allocation9], 1 }
 0x2e8   :  { %626 = vsyncpa [#allocation4], 1 }

</bundles_post_ra>
